<compile_context>
chip_gen: v6e
topology: v6e:2x2x1
jax: 0.10.0
libtpu: 0.0.40
codegen_flags: <defaults>
</compile_context>

<pallas_src>
import math

import jax
import jax.numpy as jnp
from jax.experimental import pallas as pl
from jax.experimental.pallas import tpu as pltpu


LN_EPS = 1e-5  # torch.nn.LayerNorm default


def _round_up(x, m):
    return ((x + m - 1) // m) * m


def _vmem_capacity_bytes():
    try:
        return int(pltpu.get_tpu_info().vmem_capacity_bytes)
    except Exception:
        return 64 << 20  # conservative (v7x per-TC); v5e/v6e have 128 MiB


def important_score(x, params, *, tm=512, use_bf16_matmul=True):
    """x: [b, n, c] -> [b, n, nhead]."""
    b, n, c = x.shape
    w1, b1, w2, b2, gamma, beta, w3, b3 = params
    nhead = w3.shape[1]

    f32 = jnp.float32
    mm_dtype = jnp.bfloat16 if use_bf16_matmul else f32
    w_bytes = 2 if use_bf16_matmul else 4
    x_bytes = 2 if use_bf16_matmul else 4
    out_dtype = x.dtype
    out_bytes = jnp.dtype(out_dtype).itemsize

    M = b * n
    C_pad = _round_up(c, 128)       # lane-dense feature axis
    NH_pad = _round_up(nhead, 128)  # lane-dense output / head projection
    need_mask = (c != C_pad)

    # ---- tile sizing against the real per-core VMEM capacity ----
    vmem_cap = _vmem_capacity_bytes()
    vmem_budget = max(32 << 20, (vmem_cap * 3) // 4)  # ~96 MiB on v5e/v6e, ~48 MiB on v7x

    tm_eff = min(_round_up(tm, 8), _round_up(M, 8))

    def _vmem_need(t):
        return (2 * t * C_pad * x_bytes              # x tile, double-buffered
                + 2 * t * NH_pad * out_bytes         # out tile, double-buffered
                + 2 * C_pad * C_pad * w_bytes        # W1, W2 (single-buffered)
                + C_pad * NH_pad * w_bytes           # W3    (single-buffered)
                + 6 * C_pad * 4                      # biases / gamma / beta / mask
                + 6 * t * C_pad * 4)                 # in-kernel f32 intermediates

    while tm_eff > 8 and _vmem_need(tm_eff) > vmem_budget:
        tm_eff = max(8, _round_up(tm_eff // 2, 8))

    # TODO(synk): for very large C (resident CxC weights alone exceed per-core
    # VMEM, e.g. C>=2048 on v7x) add a K-tiled weight-streaming fallback with an
    # f32 accumulator instead of keeping both full weights resident.
    vmem_limit = int(min(max(_vmem_need(tm_eff) + (8 << 20), 32 << 20), vmem_cap))

    # ---- pad / cast operands (feature axis only; zero padding keeps math exact)
    # NOTE: in an inference loop, hoist/cache these padded+cast weights outside
    # the per-call path instead of re-materializing them every forward.
    fc = C_pad - c
    fh = NH_pad - nhead

    x2d = x.reshape(M, c).astype(mm_dtype if use_bf16_matmul else f32)
    if fc:
        x2d = jnp.pad(x2d, ((0, 0), (0, fc)))

    def _padw(w, pr, pc):
        w = w.astype(mm_dtype)
        return jnp.pad(w, ((0, pr), (0, pc))) if (pr or pc) else w

    def _padv(v, p):
        v = v.astype(f32)
        return jnp.pad(v, ((0, 0), (0, p))) if p else v

    w1p = _padw(w1, fc, fc)
    w2p = _padw(w2, fc, fc)
    w3p = _padw(w3, fc, fh)
    b1p = _padv(b1, fc)
    b2p = _padv(b2, fc)
    gp = _padv(gamma, fc)
    btp = _padv(beta, fc)
    b3p = _padv(b3, fh)

    inv_c = 1.0 / float(c)                 # plain Python floats: compile-time
    inv_sqrt2 = 1.0 / math.sqrt(2.0)       # constants, not captured tracers

    def kernel(x_ref, w1_ref, b1_ref, w2_ref, b2_ref, g_ref, bta_ref,
               w3_ref, b3_ref, *rest):
        if need_mask:
            mask_ref, o_ref = rest
        else:
            (o_ref,) = rest

        x_in = x_ref[...]                        # (tm, C_pad) bf16 or f32
        x_f32 = x_in.astype(jnp.float32)
        xm = x_in.astype(mm_dtype)

        # importance_score: Linear -> GELU -> Linear
        h = jnp.dot(xm, w1_ref[...], preferred_element_type=jnp.float32)
        h = h + b1_ref[...]
        if use_bf16_matmul:
            # tanh-approx GELU: transcendental lands on the EUP slot.
            h = jax.nn.gelu(h, approximate=True)
        else:
            # exact erf GELU (matches torch.nn.GELU default)
            h = 0.5 * h * (1.0 + jax.lax.erf(h * inv_sqrt2))
        h = jnp.dot(h.astype(mm_dtype), w2_ref[...],
                    preferred_element_type=jnp.float32)
        h = h + b2_ref[...]

        # LayerNorm over the true c features.  Padded feature columns of h are
        # exactly 0 (zero-padded W/b), so the sums only see real features; the
        # mask keeps "-mean" from leaking into the variance via padded lanes.
        mean = jnp.sum(h, axis=-1, keepdims=True) * inv_c
        centered = h - mean
        if need_mask:
            centered = centered * mask_ref[...]
        var = jnp.sum(centered * centered, axis=-1, keepdims=True) * inv_c
        ln = centered * jax.lax.rsqrt(var + LN_EPS)
        ln = ln * g_ref[...] + bta_ref[...]       # padded gamma/beta are 0

        # residual add (f32), head projection, sigmoid
        y = x_f32 + ln
        logits = jnp.dot(y.astype(mm_dtype), w3_ref[...],
                         preferred_element_type=jnp.float32)
        logits = logits + b3_ref[...]
        o_ref[...] = jax.nn.sigmoid(logits).astype(o_ref.dtype)

    rows = lambda i: (i, 0)   # activations: tiled along the token axis
    full = lambda i: (0, 0)   # weights / biases: single resident block
    resident = dict(pipeline_mode=pl.Buffered(1))

    in_specs = [
        pl.BlockSpec((tm_eff, C_pad), rows),                  # x
        pl.BlockSpec((C_pad, C_pad), full, **resident),       # W1
        pl.BlockSpec((1, C_pad), full, **resident),           # b1
        pl.BlockSpec((C_pad, C_pad), full, **resident),       # W2
        pl.BlockSpec((1, C_pad), full, **resident),           # b2
        pl.BlockSpec((1, C_pad), full, **resident),           # LN gamma
        pl.BlockSpec((1, C_pad), full, **resident),           # LN beta
        pl.BlockSpec((C_pad, NH_pad), full, **resident),      # W3
        pl.BlockSpec((1, NH_pad), full, **resident),          # b3
    ]
    inputs = [x2d, w1p, b1p, w2p, b2p, gp, btp, w3p, b3p]
    if need_mask:
        maskp = (jnp.arange(C_pad) < c).astype(f32).reshape(1, C_pad)
        in_specs.append(pl.BlockSpec((1, C_pad), full, **resident))
        inputs.append(maskp)

    out2d = pl.pallas_call(
        kernel,
        out_shape=jax.ShapeDtypeStruct((M, NH_pad), out_dtype),
        grid_spec=pltpu.PrefetchScalarGridSpec(
            num_scalar_prefetch=0,
            grid=(pl.cdiv(M, tm_eff),),
            in_specs=in_specs,
            out_specs=pl.BlockSpec((tm_eff, NH_pad), rows),
        ),
        compiler_params=pltpu.CompilerParams(
            dimension_semantics=("parallel",),
            vmem_limit_bytes=vmem_limit,
        ),
    )(*inputs)

    return out2d[:, :nhead].reshape(b, n, nhead)


def init_params(key, n_dimension, nhead, dtype=jnp.float32):
    """Deterministic synthetic parameters (PyTorch-default-ish scaling)."""
    ks = jax.random.split(key, 6)
    lim_d = 1.0 / math.sqrt(n_dimension)

    w1 = jax.random.uniform(ks[0], (n_dimension, n_dimension), dtype, -lim_d, lim_d)
    b1 = jax.random.uniform(ks[1], (1, n_dimension), dtype, -lim_d, lim_d)
    w2 = jax.random.uniform(ks[2], (n_dimension, n_dimension), dtype, -lim_d, lim_d)
    b2 = jax.random.uniform(ks[3], (1, n_dimension), dtype, -lim_d, lim_d)
    gamma = jnp.ones((1, n_dimension), dtype)
    beta = jnp.zeros((1, n_dimension), dtype)
    w3 = jax.random.uniform(ks[4], (n_dimension, nhead), dtype, -lim_d, lim_d)
    b3 = jax.random.uniform(ks[5], (1, nhead), dtype, -lim_d, lim_d)
    return (w1, b1, w2, b2, gamma, beta, w3, b3)


def important_score_ref(x, params):
    """Pure-JAX f32 reference (matches the PyTorch module)."""
    w1, b1, w2, b2, gamma, beta, w3, b3 = params
    h = x @ w1 + b1
    h = 0.5 * h * (1.0 + jax.lax.erf(h / jnp.sqrt(2.0)))
    h = h @ w2 + b2
    mean = jnp.mean(h, axis=-1, keepdims=True)
    var = jnp.mean((h - mean) ** 2, axis=-1, keepdims=True)
    ln = (h - mean) * jax.lax.rsqrt(var + LN_EPS) * gamma + beta
    y = x + ln
    return jax.nn.sigmoid(y @ w3 + b3)


if __name__ == "__main__":
    key = jax.random.PRNGKey(0)
    b, n, d, nhead = 2, 8, 32, 4            # small shapes: x is [b, n, c]

    kx, kp = jax.random.split(key)
    x = jax.random.normal(kx, (b, n, d), jnp.float32)
    params = init_params(kp, d, nhead)

    ref = important_score_ref(x, params)

    # Fast path: bf16 x/weight streaming, tanh-approx GELU, f32 accumulation.
    out = jax.block_until_ready(important_score(x, params))
    assert out.shape == (b, n, nhead)
    assert jnp.allclose(out, ref, atol=3e-2, rtol=3e-2)

    # Exact path: f32 streaming + matmuls, exact erf GELU, tight tolerance.
    out_f32 = jax.block_until_ready(
        important_score(x, params, use_bf16_matmul=False))
    assert jnp.allclose(out_f32, ref, atol=1e-4, rtol=1e-4)

    print("KERNEL_OK")
</pallas_src>

<mosaic_0001>
module attributes {stable_mosaic.version = 11 : i64} {
  func.func @kernel(%arg0: i32, %arg1: memref<16x128xbf16, #tpu.memory_space<vmem>>, %arg2: memref<128x128xbf16, #tpu.memory_space<vmem>>, %arg3: memref<1x128xf32, #tpu.memory_space<vmem>>, %arg4: memref<128x128xbf16, #tpu.memory_space<vmem>>, %arg5: memref<1x128xf32, #tpu.memory_space<vmem>>, %arg6: memref<1x128xf32, #tpu.memory_space<vmem>>, %arg7: memref<1x128xf32, #tpu.memory_space<vmem>>, %arg8: memref<128x128xbf16, #tpu.memory_space<vmem>>, %arg9: memref<1x128xf32, #tpu.memory_space<vmem>>, %arg10: memref<1x128xf32, #tpu.memory_space<vmem>>, %arg11: memref<16x128xf32, #tpu.memory_space<vmem>>) attributes {dimension_semantics = [#tpu.dimension_semantics<parallel>], iteration_bounds = array<i64: 1>, scalar_prefetch = 0 : i64, scratch_operands = 0 : i64, tpu.core_type = #tpu.core_type<tc>, window_params = [{transform_indices = @transform_0, window_bounds = array<i64: 16, 128>}, {pipeline_mode = #tpu.pipeline_mode<synchronous>, transform_indices = @transform_1, window_bounds = array<i64: 128, 128>}, {pipeline_mode = #tpu.pipeline_mode<synchronous>, transform_indices = @transform_2, window_bounds = array<i64: 1, 128>}, {pipeline_mode = #tpu.pipeline_mode<synchronous>, transform_indices = @transform_3, window_bounds = array<i64: 128, 128>}, {pipeline_mode = #tpu.pipeline_mode<synchronous>, transform_indices = @transform_4, window_bounds = array<i64: 1, 128>}, {pipeline_mode = #tpu.pipeline_mode<synchronous>, transform_indices = @transform_5, window_bounds = array<i64: 1, 128>}, {pipeline_mode = #tpu.pipeline_mode<synchronous>, transform_indices = @transform_6, window_bounds = array<i64: 1, 128>}, {pipeline_mode = #tpu.pipeline_mode<synchronous>, transform_indices = @transform_7, window_bounds = array<i64: 128, 128>}, {pipeline_mode = #tpu.pipeline_mode<synchronous>, transform_indices = @transform_8, window_bounds = array<i64: 1, 128>}, {pipeline_mode = #tpu.pipeline_mode<synchronous>, transform_indices = @transform_9, window_bounds = array<i64: 1, 128>}, {transform_indices = @transform_10, window_bounds = array<i64: 16, 128>}]} {
    %c0 = arith.constant 0 : index
    %c0_0 = arith.constant 0 : index
    %0 = vector.load %arg1[%c0, %c0_0] : memref<16x128xbf16, #tpu.memory_space<vmem>>, vector<16x128xbf16>
    %1 = arith.extf %0 : vector<16x128xbf16> to vector<16x128xf32>
    %c0_1 = arith.constant 0 : index
    %c0_2 = arith.constant 0 : index
    %2 = vector.load %arg2[%c0_1, %c0_2] : memref<128x128xbf16, #tpu.memory_space<vmem>>, vector<128x128xbf16>
    %cst = arith.constant dense<0.000000e+00> : vector<16x128xf32>
    %3 = tpu.matmul %0, %2, %cst {dimension_numbers = #tpu.dot_dimension_numbers<[1], [0], [0], [1], [0, 0, 1, 1], [], []>} : vector<16x128xbf16>, vector<128x128xbf16>, vector<16x128xf32> -> vector<16x128xf32>
    %c0_3 = arith.constant 0 : index
    %c0_4 = arith.constant 0 : index
    %4 = vector.load %arg3[%c0_3, %c0_4] : memref<1x128xf32, #tpu.memory_space<vmem>>, vector<1x128xf32>
    %5 = vector.broadcast %4 : vector<1x128xf32> to vector<16x128xf32>
    %6 = arith.addf %3, %5 : vector<16x128xf32>
    %7 = arith.mulf %6, %6 : vector<16x128xf32>
    %8 = arith.mulf %6, %7 : vector<16x128xf32>
    %cst_5 = arith.constant 4.471500e-02 : f32
    %9 = vector.broadcast %cst_5 : f32 to vector<16x128xf32>
    %10 = arith.mulf %9, %8 : vector<16x128xf32>
    %11 = arith.addf %6, %10 : vector<16x128xf32>
    %cst_6 = arith.constant 0.797884583 : f32
    %12 = vector.broadcast %cst_6 : f32 to vector<16x128xf32>
    %13 = arith.mulf %12, %11 : vector<16x128xf32>
    %14 = math.tanh %13 : vector<16x128xf32>
    %cst_7 = arith.constant 1.000000e+00 : f32
    %15 = vector.broadcast %cst_7 : f32 to vector<16x128xf32>
    %16 = arith.addf %15, %14 : vector<16x128xf32>
    %cst_8 = arith.constant 5.000000e-01 : f32
    %17 = vector.broadcast %cst_8 : f32 to vector<16x128xf32>
    %18 = arith.mulf %17, %16 : vector<16x128xf32>
    %19 = arith.mulf %6, %18 : vector<16x128xf32>
    %20 = arith.truncf %19 : vector<16x128xf32> to vector<16x128xbf16>
    %c0_9 = arith.constant 0 : index
    %c0_10 = arith.constant 0 : index
    %21 = vector.load %arg4[%c0_9, %c0_10] : memref<128x128xbf16, #tpu.memory_space<vmem>>, vector<128x128xbf16>
    %cst_11 = arith.constant dense<0.000000e+00> : vector<16x128xf32>
    %22 = tpu.matmul %20, %21, %cst_11 {dimension_numbers = #tpu.dot_dimension_numbers<[1], [0], [0], [1], [0, 0, 1, 1], [], []>} : vector<16x128xbf16>, vector<128x128xbf16>, vector<16x128xf32> -> vector<16x128xf32>
    %c0_12 = arith.constant 0 : index
    %c0_13 = arith.constant 0 : index
    %23 = vector.load %arg5[%c0_12, %c0_13] : memref<1x128xf32, #tpu.memory_space<vmem>>, vector<1x128xf32>
    %24 = vector.broadcast %23 : vector<1x128xf32> to vector<16x128xf32>
    %25 = arith.addf %22, %24 : vector<16x128xf32>
    %cst_14 = arith.constant dense<0.000000e+00> : vector<16xf32>
    %26 = vector.multi_reduction <add>, %25, %cst_14 [1] : vector<16x128xf32> to vector<16xf32>
    %27 = vector.shape_cast %26 : vector<16xf32> to vector<16x1xf32>
    %cst_15 = arith.constant 3.125000e-02 : f32
    %28 = vector.broadcast %cst_15 : f32 to vector<16x1xf32>
    %29 = arith.mulf %27, %28 : vector<16x1xf32>
    %30 = vector.broadcast %29 : vector<16x1xf32> to vector<16x128xf32>
    %31 = arith.subf %25, %30 : vector<16x128xf32>
    %c0_16 = arith.constant 0 : index
    %c0_17 = arith.constant 0 : index
    %32 = vector.load %arg10[%c0_16, %c0_17] : memref<1x128xf32, #tpu.memory_space<vmem>>, vector<1x128xf32>
    %33 = vector.broadcast %32 : vector<1x128xf32> to vector<16x128xf32>
    %34 = arith.mulf %31, %33 : vector<16x128xf32>
    %35 = arith.mulf %34, %34 : vector<16x128xf32>
    %cst_18 = arith.constant dense<0.000000e+00> : vector<16xf32>
    %36 = vector.multi_reduction <add>, %35, %cst_18 [1] : vector<16x128xf32> to vector<16xf32>
    %37 = vector.shape_cast %36 : vector<16xf32> to vector<16x1xf32>
    %cst_19 = arith.constant 3.125000e-02 : f32
    %38 = vector.broadcast %cst_19 : f32 to vector<16x1xf32>
    %39 = arith.mulf %37, %38 : vector<16x1xf32>
    %cst_20 = arith.constant 9.99999974E-6 : f32
    %40 = vector.broadcast %cst_20 : f32 to vector<16x1xf32>
    %41 = arith.addf %39, %40 : vector<16x1xf32>
    %42 = math.rsqrt %41 : vector<16x1xf32>
    %43 = vector.broadcast %42 : vector<16x1xf32> to vector<16x128xf32>
    %44 = arith.mulf %34, %43 : vector<16x128xf32>
    %c0_21 = arith.constant 0 : index
    %c0_22 = arith.constant 0 : index
    %45 = vector.load %arg6[%c0_21, %c0_22] : memref<1x128xf32, #tpu.memory_space<vmem>>, vector<1x128xf32>
    %46 = vector.broadcast %45 : vector<1x128xf32> to vector<16x128xf32>
    %47 = arith.mulf %44, %46 : vector<16x128xf32>
    %c0_23 = arith.constant 0 : index
    %c0_24 = arith.constant 0 : index
    %48 = vector.load %arg7[%c0_23, %c0_24] : memref<1x128xf32, #tpu.memory_space<vmem>>, vector<1x128xf32>
    %49 = vector.broadcast %48 : vector<1x128xf32> to vector<16x128xf32>
    %50 = arith.addf %47, %49 : vector<16x128xf32>
    %51 = arith.addf %1, %50 : vector<16x128xf32>
    %52 = arith.truncf %51 : vector<16x128xf32> to vector<16x128xbf16>
    %c0_25 = arith.constant 0 : index
    %c0_26 = arith.constant 0 : index
    %53 = vector.load %arg8[%c0_25, %c0_26] : memref<128x128xbf16, #tpu.memory_space<vmem>>, vector<128x128xbf16>
    %cst_27 = arith.constant dense<0.000000e+00> : vector<16x128xf32>
    %54 = tpu.matmul %52, %53, %cst_27 {dimension_numbers = #tpu.dot_dimension_numbers<[1], [0], [0], [1], [0, 0, 1, 1], [], []>} : vector<16x128xbf16>, vector<128x128xbf16>, vector<16x128xf32> -> vector<16x128xf32>
    %c0_28 = arith.constant 0 : index
    %c0_29 = arith.constant 0 : index
    %55 = vector.load %arg9[%c0_28, %c0_29] : memref<1x128xf32, #tpu.memory_space<vmem>>, vector<1x128xf32>
    %56 = vector.broadcast %55 : vector<1x128xf32> to vector<16x128xf32>
    %57 = arith.addf %54, %56 : vector<16x128xf32>
    %58 = arith.negf %57 : vector<16x128xf32>
    %59 = math.exp %58 : vector<16x128xf32>
    %cst_30 = arith.constant 1.000000e+00 : f32
    %60 = vector.broadcast %cst_30 : f32 to vector<16x128xf32>
    %61 = arith.addf %60, %59 : vector<16x128xf32>
    %62 = arith.divf %60, %61 : vector<16x128xf32>
    %c0_31 = arith.constant 0 : index
    %c0_32 = arith.constant 0 : index
    %63 = vector.load %arg11[%c0_31, %c0_32] : memref<16x128xf32, #tpu.memory_space<vmem>>, vector<16x128xf32>
    tpu.vector_store %arg11[%c0_31, %c0_32], %62 {strides = array<i32>} : memref<16x128xf32, #tpu.memory_space<vmem>>, vector<16x128xf32>,
    return
  }
  func.func @transform_0(%arg0: i32) -> (i32, i32) {
    %c0_i32 = arith.constant 0 : i32
    %c0_i32_0 = arith.constant 0 : i32
    return %arg0, %c0_i32 : i32, i32
  }
  func.func @transform_1(%arg0: i32) -> (i32, i32) {
    %c0_i32 = arith.constant 0 : i32
    %c0_i32_0 = arith.constant 0 : i32
    %c0_i32_1 = arith.constant 0 : i32
    return %c0_i32, %c0_i32_0 : i32, i32
  }
  func.func @transform_2(%arg0: i32) -> (i32, i32) {
    %c0_i32 = arith.constant 0 : i32
    %c0_i32_0 = arith.constant 0 : i32
    %c0_i32_1 = arith.constant 0 : i32
    return %c0_i32, %c0_i32_0 : i32, i32
  }
  func.func @transform_3(%arg0: i32) -> (i32, i32) {
    %c0_i32 = arith.constant 0 : i32
    %c0_i32_0 = arith.constant 0 : i32
    %c0_i32_1 = arith.constant 0 : i32
    return %c0_i32, %c0_i32_0 : i32, i32
  }
  func.func @transform_4(%arg0: i32) -> (i32, i32) {
    %c0_i32 = arith.constant 0 : i32
    %c0_i32_0 = arith.constant 0 : i32
    %c0_i32_1 = arith.constant 0 : i32
    return %c0_i32, %c0_i32_0 : i32, i32
  }
  func.func @transform_5(%arg0: i32) -> (i32, i32) {
    %c0_i32 = arith.constant 0 : i32
    %c0_i32_0 = arith.constant 0 : i32
    %c0_i32_1 = arith.constant 0 : i32
    return %c0_i32, %c0_i32_0 : i32, i32
  }
  func.func @transform_6(%arg0: i32) -> (i32, i32) {
    %c0_i32 = arith.constant 0 : i32
    %c0_i32_0 = arith.constant 0 : i32
    %c0_i32_1 = arith.constant 0 : i32
    return %c0_i32, %c0_i32_0 : i32, i32
  }
  func.func @transform_7(%arg0: i32) -> (i32, i32) {
    %c0_i32 = arith.constant 0 : i32
    %c0_i32_0 = arith.constant 0 : i32
    %c0_i32_1 = arith.constant 0 : i32
    return %c0_i32, %c0_i32_0 : i32, i32
  }
  func.func @transform_8(%arg0: i32) -> (i32, i32) {
    %c0_i32 = arith.constant 0 : i32
    %c0_i32_0 = arith.constant 0 : i32
    %c0_i32_1 = arith.constant 0 : i32
    return %c0_i32, %c0_i32_0 : i32, i32
  }
  func.func @transform_9(%arg0: i32) -> (i32, i32) {
    %c0_i32 = arith.constant 0 : i32
    %c0_i32_0 = arith.constant 0 : i32
    %c0_i32_1 = arith.constant 0 : i32
    return %c0_i32, %c0_i32_0 : i32, i32
  }
  func.func @transform_10(%arg0: i32) -> (i32, i32) {
    %c0_i32 = arith.constant 0 : i32
    %c0_i32_0 = arith.constant 0 : i32
    return %arg0, %c0_i32 : i32, i32
  }
}

</mosaic_0001>

<bundles_post_ra>
// kernel: tpu_custom_call.1
= control target key start
LH: loop header
LB: loop body
LE: loop exit
PB: predicated region body
PF: predicated region fallthrough
CT: control target
= control target key end

     0   :  { %15 = vsyncpa [#allocation3], 0  ;;  %s969_s0 = inlined_call_operand.hbm [shape: bf16[16,128], index: 0, kind: input, shape index: {}]   ;;  %s970_s1 = inlined_call_operand.hbm [shape: bf16[128,128], index: 1, kind: input, shape index: {}]   ;;  %s971_s2 = inlined_call_operand.vmem [shape: f32[1,128], index: 2, kind: input, shape index: {}]   ;;  %s972_s3 = inlined_call_operand.hbm [shape: bf16[128,128], index: 3, kind: input, shape index: {}]   ;;  %s973_s4 = inlined_call_operand.vmem [shape: f32[1,128], index: 4, kind: input, shape index: {}]   ;;  %s974_s5 = inlined_call_operand.vmem [shape: f32[1,128], index: 5, kind: input, shape index: {}]   ;;  %s975_s6 = inlined_call_operand.vmem [shape: f32[1,128], index: 6, kind: input, shape index: {}]   ;;  %s976_s7 = inlined_call_operand.hbm [shape: bf16[128,128], index: 7, kind: input, shape index: {}]   ;;  %s977_s8 = inlined_call_operand.vmem [shape: f32[1,128], index: 8, kind: input, shape index: {}]   ;;  %s978_s9 = inlined_call_operand.vmem [shape: f32[1,128], index: 9, kind: input, shape index: {}]   ;;  %s979_s10 = inlined_call_operand.hbm [shape: f32[16,128], index: 10, kind: output, shape index: {}]  }
   0x1   :  { %16 = vsyncpa [#allocation6], 0 }
   0x2   :  { %17 = vsyncpa [#allocation9], 0 }
   0x3   :  { %18 = vsyncpa [#allocation4], 0  ;;  %s823_s13 = smov [#allocation5]   ;;  %s824_s15 = smov [#allocation2]  }
   0x4   :  { %s36_s14 = sshll.u32 %s823_s13, 4  ;;  %s24_s16 = sshll.u32 %s824_s15, 4  ;;  %s37_s14 = int_to_ptr.vmem [resolvable:$true] %s36_s14  ;;  %s25_s16 = int_to_ptr.vmem [resolvable:$true] %s24_s16 }
   0x5   :  { %s723_s17 = scalar_lea.vmem %s37_s14, 1024  ;;  %p728_p1 = scmp.lt.s32.totalorder %s37_s14, %s37_s14 }
   0x6   :  { %p724_p0 = scmp.ne.s32.totalorder %s37_s14, %s723_s17  ;;  %p729_p2 = scmp.lt.s32.totalorder %s723_s17, %s723_s17 }
   0x8   :  { %p730_p3 = por %p729_p2, %p728_p1 }
   0xa   :  { %p731_p4 = pnand %p730_p3, %p724_p0 }
   0xc   :  { %734 = shalt.err (!%p731_p4)
}
   0xd   :  { %s825_s18 = smov 64   ;;  %s826_s19 = smov 4  }
   0xe   :  { %42 = dma.hbm_to_vmem [thread:$0]  %s970_s1, 1024, %s37_s14, [#allocation6], %s825_s18, %s825_s18, %s826_s19  }
   0xf   :  { %s743_s22 = scalar_lea.vmem %s25_s16, 128  ;;  %p748_p6 = scmp.lt.s32.totalorder %s25_s16, %s25_s16 }
  0x10   :  { %p744_p5 = scmp.ne.s32.totalorder %s25_s16, %s743_s22  ;;  %p749_p7 = scmp.lt.s32.totalorder %s743_s22, %s743_s22 }
  0x12   :  { %p750_p8 = por %p749_p7, %p748_p6 }
  0x14   :  { %p751_p9 = pnand %p750_p8, %p744_p5 }
  0x16   :  { %754 = shalt.err (!%p751_p9)
}
  0x17   :  { %30 = dma.hbm_to_vmem [thread:$0]  %s969_s0, 128, %s25_s16, [#allocation3], %s825_s18, %s825_s18, %s826_s19  }
  0x18   :  { %s827_s25 = smov [#allocation7]   ;;  %s828_s27 = smov [#allocation8]  }
  0x19   :  { %s50_s26 = sshll.u32 %s827_s25, 4  ;;  %s68_s28 = sshll.u32 %s828_s27, 4  ;;  %s51_s26 = int_to_ptr.vmem [resolvable:$true] %s50_s26  ;;  %s69_s28 = int_to_ptr.vmem [resolvable:$true] %s68_s28 }
  0x1a   :  { %s763_s1 = scalar_lea.vmem %s51_s26, 1024  ;;  %p768_p11 = scmp.lt.s32.totalorder %s51_s26, %s51_s26 }
  0x1b   :  { %p764_p10 = scmp.ne.s32.totalorder %s51_s26, %s763_s1  ;;  %p769_p12 = scmp.lt.s32.totalorder %s763_s1, %s763_s1 }
  0x1d   :  { %p770_p13 = por %p769_p12, %p768_p11 }
  0x1f   :  { %p771_p0 = pnand %p770_p13, %p764_p10 }
  0x21   :  { %774 = shalt.err (!%p771_p0)
}
  0x22   :  { %56 = dma.hbm_to_vmem [thread:$0]  %s972_s3, 1024, %s51_s26, [#allocation6], %s825_s18, %s825_s18, %s826_s19  }
  0x23   :  { %s783_s0 = scalar_lea.vmem %s69_s28, 1024  ;;  %p788_p2 = scmp.lt.s32.totalorder %s69_s28, %s69_s28 }
  0x24   :  { %p784_p1 = scmp.ne.s32.totalorder %s69_s28, %s783_s0  ;;  %p789_p3 = scmp.lt.s32.totalorder %s783_s0, %s783_s0 }
  0x26   :  { %p790_p4 = por %p789_p3, %p788_p2 }
  0x28   :  { %p791_p5 = pnand %p790_p4, %p784_p1 }
  0x2a   :  { %794 = shalt.err (!%p791_p5)
}
  0x2b   :  { %74 = dma.hbm_to_vmem [thread:$0]  %s976_s7, 1024, %s69_s28, [#allocation9], %s825_s18, %s825_s18, %s826_s19  }
  0x2c   :  { %815 = dma.done.wait [#allocation3], 128  }
  0x2d   :  { %816 = vsyncadd [#allocation3], 4294967168 }
  0x2e   :  { %817 = dma.done.wait [#allocation6], 2048  }
  0x2f   :  { %818 = vsyncadd [#allocation6], 4294965248 }
  0x30   :  { %819 = dma.done.wait [#allocation9], 1024  }
  0x31   :  { %820 = vsyncadd [#allocation9], 4294966272  ;;  %v829_v0 = vmov 0.0   ;;  %vm830_vm0 = vmmov 0   ;;  %v673_v1 = vld [vmem:[#allocation5 + $0x38] sm:$0xff]   ;;  %v674_v2 = vld [vmem:[#allocation5 + $0x30] sm:$0xff]  }
  0x32   :  { %602 = vmatprep.subr.bf16.mxu0 %v829_v0  ;;  %618 = vmatprep.mubr.msk.bf16.mxu0 %vm830_vm0, %v829_v0  ;;  %v675_v3 = vld [vmem:[#allocation5 + $0x28] sm:$0xff]   ;;  %v676_v4 = vld [vmem:[#allocation5 + $0x20] sm:$0xff]   ;;  %v677_v5 = vld [vmem:[#allocation5 + $0x18] sm:$0xff]  }
  0x33   :  { %622 = vmatprep.subr.bf16.mxu1 %v829_v0  ;;  %638 = vmatprep.mubr.msk.bf16.mxu1 %vm830_vm0, %v829_v0  ;;  %v678_v6 = vld [vmem:[#allocation5 + $0x10] sm:$0xff]   ;;  %v679_v7 = vld [vmem:[#allocation5 + $0x8] sm:$0xff]   ;;  %v680_v8 = vld [vmem:[#allocation5] sm:$0xff]  }
  0x34   :  { %603 = vmatpush3.bf16.msra.mxu0 %v673_v1  ;;  %v925_v9 = vld [vmem:[#allocation2] sm:$0xff]   ;;  %v683_v11 = vld [vmem:[#allocation7 + $0x30] sm:$0xff]   ;;  %v684_v12 = vld [vmem:[#allocation7 + $0x28] sm:$0xff]  }
  0x35   :  { %604 = vmatprep.subr.bf16.mxu0 %v829_v0  ;;  %v682_v10 = vld [vmem:[#allocation7 + $0x38] sm:$0xff]   ;;  %v685_v13 = vld [vmem:[#allocation7 + $0x20] sm:$0xff]   ;;  %v687_v15 = vld [vmem:[#allocation7 + $0x10] sm:$0xff]  }
  0x36   :  { %623 = vmatpush3.bf16.msra.mxu1 %v682_v10  ;;  %v686_v14 = vld [vmem:[#allocation7 + $0x18] sm:$0xff]   ;;  %v688_v16 = vld [vmem:[#allocation7 + $0x8] sm:$0xff]   ;;  %v689_v17 = vld [vmem:[#allocation7] sm:$0xff]  }
  0x37   :  { %624 = vmatprep.subr.bf16.mxu1 %v829_v0  ;;  %v542_v18 = vld [vmem:[%s971_s2] ss:$0 sm:$0xff]  ;;  %v691_v63 = vld [vmem:[#allocation8 + $0x30] sm:$0xff]   ;;  %v692_v1 = vld [vmem:[#allocation8 + $0x28] sm:$0xff]  }
  0x38   :  { %605 = vmatpush3.bf16.msra.mxu0 %v674_v2  ;;  %v552_v44 = vld [vmem:[%s973_s4] ss:$0 sm:$0xff]  ;;  %v693_v2 = vld [vmem:[#allocation8 + $0x20] sm:$0xff]  }
  0x39   :  { %606 = vmatprep.subr.bf16.mxu0 %v829_v0  ;;  %v561_v53 = vld [vmem:[%s978_s9] ss:$0 sm:$0xff] }
  0x3a   :  { %625 = vmatpush3.bf16.msra.mxu1 %v683_v11  ;;  %v690_v62 = vld [vmem:[#allocation8 + $0x38] sm:$0xff]  }
  0x3b   :  { %626 = vmatprep.subr.bf16.mxu1 %v829_v0 }
  0x3c   :  { %607 = vmatpush3.bf16.msra.mxu0 %v675_v3  ;;  %v694_v3 = vld [vmem:[#allocation8 + $0x18] sm:$0xff]  }
  0x3d   :  { %608 = vmatprep.subr.bf16.mxu0 %v829_v0 }
  0x3e   :  { %627 = vmatpush3.bf16.msra.mxu1 %v684_v12 }
  0x3f   :  { %628 = vmatprep.subr.bf16.mxu1 %v829_v0 }
  0x40   :  { %609 = vmatpush3.bf16.msra.mxu0 %v676_v4  ;;  %v695_v4 = vld [vmem:[#allocation8 + $0x10] sm:$0xff]  }
  0x41   :  { %610 = vmatprep.subr.bf16.mxu0 %v829_v0 }
  0x42   :  { %629 = vmatpush3.bf16.msra.mxu1 %v685_v13 }
  0x43   :  { %630 = vmatprep.subr.bf16.mxu1 %v829_v0 }
  0x44   :  { %611 = vmatpush3.bf16.msra.mxu0 %v677_v5  ;;  %v696_v5 = vld [vmem:[#allocation8 + $0x8] sm:$0xff]  }
  0x45   :  { %612 = vmatprep.subr.bf16.mxu0 %v829_v0 }
  0x46   :  { %631 = vmatpush3.bf16.msra.mxu1 %v686_v14 }
  0x47   :  { %632 = vmatprep.subr.bf16.mxu1 %v829_v0 }
  0x48   :  { %613 = vmatpush3.bf16.msra.mxu0 %v678_v6  ;;  %v697_v6 = vld [vmem:[#allocation8] sm:$0xff]  }
  0x49   :  { %614 = vmatprep.subr.bf16.mxu0 %v829_v0 }
  0x4a   :  { %633 = vmatpush3.bf16.msra.mxu1 %v687_v15  ;;  %v562_v15 = vld [vmem:[%s974_s5] ss:$0 sm:$0xff] }
  0x4b   :  { %634 = vmatprep.subr.bf16.mxu1 %v829_v0 }
  0x4c   :  { %615 = vmatpush3.bf16.msra.mxu0 %v679_v7 }
  0x4d   :  { %616 = vmatprep.subr.bf16.mxu0 %v829_v0 }
  0x4e   :  { %635 = vmatpush3.bf16.msra.mxu1 %v688_v16 }
  0x4f   :  { %636 = vmatprep.subr.bf16.mxu1 %v829_v0 }
  0x50   :  { %617 = vmatpush3.bf16.msra.mxu0 %v680_v8 }
  0x51   :  { %642 = vmatprep.subr.bf16.mxu0 %v829_v0 }
  0x52   :  { %637 = vmatpush3.bf16.msra.mxu1 %v689_v17 }
  0x53   :  { %619 = vmatmul.mubr.bf16.vlgmr.msra.gmra.mxu0 %v925_v9 }
  0x54   :  { %658 = vmatprep.mubr.msk.bf16.mxu0 %vm830_vm0, %v829_v0  ;;  %643 = vmatpush3.bf16.msra.mxu0 %v690_v62 }
  0x55   :  { %644 = vmatprep.subr.bf16.mxu0 %v829_v0 }
  0x58   :  { %645 = vmatpush3.bf16.msra.mxu0 %v691_v63 }
  0x59   :  { %646 = vmatprep.subr.bf16.mxu0 %v829_v0 }
  0x5c   :  { %647 = vmatpush3.bf16.msra.mxu0 %v692_v1 }
  0x5d   :  { %648 = vmatprep.subr.bf16.mxu0 %v829_v0 }
  0x60   :  { %649 = vmatpush3.bf16.msra.mxu0 %v693_v2 }
  0x61   :  { %650 = vmatprep.subr.bf16.mxu0 %v829_v0 }
  0x64   :  { %651 = vmatpush3.bf16.msra.mxu0 %v694_v3 }
  0x65   :  { %652 = vmatprep.subr.bf16.mxu0 %v829_v0 }
  0x68   :  { %653 = vmatpush3.bf16.msra.mxu0 %v695_v4 }
  0x69   :  { %654 = vmatprep.subr.bf16.mxu0 %v829_v0 }
  0x6c   :  { %655 = vmatpush3.bf16.msra.mxu0 %v696_v5 }
  0x6d   :  { %656 = vmatprep.subr.bf16.mxu0 %v829_v0  ;;  %v563_v0 = vld [vmem:[%s975_s6] ss:$0 sm:$0xff]  ;;  %s831_s6 = smov [#allocation10]  }
  0x6e   :  { %s528_s19 = sshll.u32 %s831_s6, 4  ;;  %s529_s19 = int_to_ptr.vmem [resolvable:$true] %s528_s19 }
  0x6f   :  { %p800_p7 = scmp.lt.s32.totalorder %s529_s19, %s529_s19 }
  0x70   :  { %657 = vmatpush3.bf16.msra.mxu0 %v697_v6 }
 0x113   :  { %v207_v19 = vpop.f32.mrf.mxu0 }
 0x114   :  { %v208_v20 = vadd.f32 %v542_v18, %v207_v19 }
 0x115   :  { %v620_v21 = vpop.f32.mrf.mxu0 }
 0x116   :  { %v214_v22 = vmul.f32 %v208_v20, %v208_v20  ;;  %v95_v21 = vunpack.c.h.bf16 %v925_v9 }
 0x117   :  { %v210_v23 = vpop.f32.mrf.mxu0 }
 0x118   :  { %v216_v24 = vmul.f32 %v214_v22, %v208_v20  ;;  %v211_v25 = vadd.f32 %v542_v18, %v210_v23 }
 0x119   :  { %v621_v26 = vpop.f32.mrf.mxu0 }
 0x11a   :  { %v218_v27 = vmul.f32 0.044715, %v216_v24  ;;  %v215_v28 = vmul.f32 %v211_v25, %v211_v25 }
 0x11c   :  { %v220_v29 = vadd.f32 %v218_v27, %v208_v20  ;;  %v217_v30 = vmul.f32 %v215_v28, %v211_v25  ;;  %v564_v28 = vld [vmem:[%s977_s8] ss:$0 sm:$0xff]  ;;  %s795_s8 = scalar_lea.vmem %s529_s19, 256 }
 0x11d   :  { %p796_p6 = scmp.ne.s32.totalorder %s529_s19, %s795_s8  ;;  %p801_p8 = scmp.lt.s32.totalorder %s795_s8, %s795_s8 }
 0x11e   :  { %v222_v31 = vmul.f32 0.7978846, %v220_v29  ;;  %v219_v32 = vmul.f32 0.044715, %v217_v30 }
 0x11f   :  { %p802_p9 = por %p801_p8, %p800_p7 }
 0x120   :  { %699 = vtanh.f32 %v222_v31  ;;  %v221_v33 = vadd.f32 %v219_v32, %v211_v25 }
 0x121   :  { %p803_p10 = pnand %p802_p9, %p796_p6 }
 0x122   :  { %v223_v34 = vmul.f32 0.7978846, %v221_v33 }
 0x124   :  { %701 = vtanh.f32 %v223_v34 }
 0x12d   :  { %v700_v35 = vpop.eup %699 }
 0x12e   :  { %v226_v36 = vadd.f32 1.0, %v700_v35 }
 0x130   :  { %v228_v39 = vmul.f32 0.5, %v226_v36 }
 0x131   :  { %v702_v37 = vpop.eup %701 }
 0x132   :  { %v227_v38 = vadd.f32 1.0, %v702_v37  ;;  %v230_v41 = vmul.f32 %v228_v39, %v208_v20  ;;  %v94_v20 = vunpack.c.l.bf16 %v925_v9 }
 0x134   :  { %v229_v40 = vmul.f32 0.5, %v227_v38 }
 0x136   :  { %v231_v42 = vmul.f32 %v229_v40, %v211_v25 }
 0x138   :  { %v232_v43 = vpack.c.bf16 %v231_v42, %v230_v41 }
 0x13a   :  { %639 = vmatmul.mubr.bf16.vlgmr.msra.gmra.mxu1 %v232_v43 }
 0x1fa   :  { %v338_v45 = vpop.f32.mrf.mxu1 }
 0x1fb   :  { %v339_v46 = vadd.f32 %v552_v44, %v338_v45 }
 0x1fc   :  { %v640_v47 = vpop.f32.mrf.mxu1 }
 0x1fd   :  { %345 = vadd.xlane.f32.xlu0 %v339_v46 }
 0x1fe   :  { %v341_v48 = vpop.f32.mrf.mxu1 }
 0x1ff   :  { %v342_v49 = vadd.f32 %v552_v44, %v341_v48 }
 0x200   :  { %v641_v50 = vpop.f32.mrf.mxu1 }
 0x201   :  { %347 = vadd.xlane.f32.xlu0 %v342_v49 }
 0x286   :  { %v346_v51 = vpop.xlane.xlu0 %345 }
 0x287   :  { %v349_v52 = vmul.f32 0.03125, %v346_v51 }
 0x289   :  { %v351_v54 = vsub.f32 %v339_v46, %v349_v52 }
 0x28a   :  { %v348_v55 = vpop.xlane.xlu0 %347 }
 0x28b   :  { %v350_v56 = vmul.f32 0.03125, %v348_v55  ;;  %v360_v57 = vmul.f32 %v561_v53, %v351_v54 }
 0x28d   :  { %v352_v58 = vsub.f32 %v342_v49, %v350_v56  ;;  %v362_v59 = vmul.f32 %v360_v57, %v360_v57 }
 0x28f   :  { %364 = vadd.xlane.f32.xlu1 %v362_v59  ;;  %v361_v60 = vmul.f32 %v561_v53, %v352_v58 }
 0x291   :  { %v363_v61 = vmul.f32 %v361_v60, %v361_v60 }
 0x293   :  { %366 = vadd.xlane.f32.xlu1 %v363_v61 }
 0x318   :  { %v365_v7 = vpop.xlane.xlu1 %364 }
 0x319   :  { %v368_v8 = vmul.f32 0.03125, %v365_v7 }
 0x31b   :  { %v370_v10 = vadd.f32 1e-05, %v368_v8 }
 0x31c   :  { %v367_v11 = vpop.xlane.xlu1 %366 }
 0x31d   :  { %703 = vrsqrt.f32 %v370_v10  ;;  %v369_v12 = vmul.f32 0.03125, %v367_v11 }
 0x31f   :  { %v371_v13 = vadd.f32 1e-05, %v369_v12 }
 0x321   :  { %705 = vrsqrt.f32 %v371_v13 }
 0x32a   :  { %v704_v14 = vpop.eup %703 }
 0x32b   :  { %v374_v16 = vmul.f32 %v704_v14, %v360_v57 }
 0x32d   :  { %v383_v17 = vmul.f32 %v562_v15, %v374_v16 }
 0x32e   :  { %v706_v18 = vpop.eup %705 }
 0x32f   :  { %v375_v19 = vmul.f32 %v706_v18, %v361_v60  ;;  %v392_v23 = vadd.f32 %v563_v0, %v383_v17 }
 0x331   :  { %v384_v22 = vmul.f32 %v562_v15, %v375_v19  ;;  %v394_v25 = vadd.f32 %v392_v23, %v94_v20 }
 0x333   :  { %v393_v24 = vadd.f32 %v563_v0, %v384_v22 }
 0x335   :  { %v395_v26 = vadd.f32 %v393_v24, %v95_v21 }
 0x337   :  { %v396_v27 = vpack.c.bf16 %v395_v26, %v394_v25 }
 0x339   :  { %659 = vmatmul.mubr.bf16.vlgmr.msra.gmra.mxu0 %v396_v27 }
 0x3f9   :  { %v502_v29 = vpop.f32.mrf.mxu0 }
 0x3fa   :  { %v503_v30 = vadd.f32 %v564_v28, %v502_v29 }
 0x3fb   :  { %v660_v31 = vpop.f32.mrf.mxu0 }
 0x3fc   :  { %v573_v32 = vmul.f32 -1.442695, %v503_v30 }
 0x3fd   :  { %v505_v33 = vpop.f32.mrf.mxu0 }
 0x3fe   :  { %707 = vpow2.f32 %v573_v32  ;;  %v506_v34 = vadd.f32 %v564_v28, %v505_v33 }
 0x3ff   :  { %v661_v35 = vpop.f32.mrf.mxu0 }
 0x400   :  { %v574_v9 = vmul.f32 -1.442695, %v506_v34 }
 0x402   :  { %709 = vpow2.f32 %v574_v9 }
 0x40b   :  { %v708_v36 = vpop.eup %707 }
 0x40c   :  { %v515_v37 = vadd.f32 1.0, %v708_v36 }
 0x40e   :  { %711 = vrcp.f32 %v515_v37 }
 0x40f   :  { %v710_v38 = vpop.eup %709 }
 0x410   :  { %v516_v39 = vadd.f32 1.0, %v710_v38 }
 0x412   :  { %713 = vrcp.f32 %v516_v39 }
 0x41b   :  { %v712_v40 = vpop.eup %711 }
 0x41c   :  { %521 = vst [vmem:[#allocation10] sm:$0xff] %v712_v40 }
 0x41f   :  { %v714_v41 = vpop.eup %713 }
 0x420   :  { %522 = vst [vmem:[#allocation10 + $0x8] sm:$0xff] %v714_v41 }
 0x421   :  { %806 = shalt.err (!%p803_p10)
}
 0x422   :  { %s832_s20 = smov 128   ;;  %s833_s21 = smov 8  }
 0x423   :  { %534 = dma.vmem_to_hbm [thread:$0]  %s529_s19, 256, %s979_s10, [#allocation4], %s832_s20, %s832_s20, %s833_s21  }
 0x424   :  { %821 = dma.done.wait [#allocation4], 256  }
 0x425   :  { %822 = vsyncadd [#allocation4], 4294967040 }
 0x426   :  { %538 = vsyncpa [#allocation3], 1 }
 0x427   :  { %539 = vsyncpa [#allocation6], 1 }
 0x428   :  { %540 = vsyncpa [#allocation9], 1 }
 0x429   :  { %541 = vsyncpa [#allocation4], 1 }

</bundles_post_ra>
